<compile_context>
chip_gen: v6e
topology: v6e:2x2x1
jax: 0.10.0
libtpu: 0.0.40
codegen_flags: <defaults>
</compile_context>

<pallas_src>
import jax
import jax.numpy as jnp
from jax import lax
from jax.experimental import pallas as pl
from jax.experimental.pallas import tpu as pltpu

_F32 = jnp.float32
_CP = 128          # lane-dense padded class dimension for the logits store


def _vmem_spec():
    # Whole-array-resident-in-VMEM spec (shapes here are small; no tiling/grid).
    return pl.BlockSpec(memory_space=pltpu.MemorySpace.VMEM)


# ---------------------------------------------------------------------------
# in-kernel helpers
# ---------------------------------------------------------------------------
def _dinv_col(a):
    # rsqrt of row-sum degrees as an (N, 1) column; degree <= 0 maps to 0.
    deg = jnp.sum(a, axis=1, keepdims=True)
    return jnp.where(deg > 0, lax.rsqrt(deg), 0.0)


# ---------------------------------------------------------------------------
# kernel A: norm_Adj + GCNDiagEncoder + row-norm + similarity graph
# ---------------------------------------------------------------------------
def _embed_similarity_kernel(adj_ref, x_ref, wg1_ref, wg2_ref, s_ref):
    adj = adj_ref[...]
    dinv = _dinv_col(adj)                       # Normalize(add_loop=False) degrees
    # (D^-1/2 A D^-1/2) @ Z  ==  dinv * (A @ (dinv * Z))  — norm_Adj never materialized.
    h = dinv * jnp.dot(adj, dinv * (x_ref[...] * wg1_ref[...]),
                       preferred_element_type=_F32)
    h = jnp.tanh(h)
    h = dinv * jnp.dot(adj, dinv * (h * wg2_ref[...]),
                       preferred_element_type=_F32)
    # normalize_e: F.normalize(p=2, eps=1e-12), via EUP rsqrt
    sumsq = jnp.sum(h * h, axis=-1, keepdims=True)
    h = h * lax.rsqrt(jnp.maximum(sumsq, 1e-24))
    # cal_similarity_graph: H_lo H_lo^T + H_hi H_hi^T == H H^T (disjoint halves)
    s_ref[...] = lax.dot_general(h, h, (((1,), (1,)), ((), ())),
                                 preferred_element_type=_F32)


# ---------------------------------------------------------------------------
# kernel B: KNN + Symmetry(1) + Interpolate(1,1) + norm + GCNEncoder task head
# ---------------------------------------------------------------------------
def _sparsify_gcn_kernel(s_ref, thr_col_ref, thr_row_ref, adj_ref, x_ref,
                         w1_ref, b1_ref, w2_ref, b2_ref,
                         new_ref, final_ref, out_ref):
    s = s_ref[...]
    # KNN(K, sparse_out=True): keep per-row top-K entries of S (dense mask form).
    adj_new = jnp.where(s >= thr_col_ref[...], s, 0.0)
    # Symmetry(1): Adj_new + Adj_new.T.  S is bit-exact symmetric here (single f32
    # H·H^T MXU pass), so the transpose equals a column-threshold mask — no in-kernel
    # transpose needed.  (Revisit if S is ever tiled / computed in bf16.)
    adj_new_sym = adj_new + jnp.where(s >= thr_row_ref[...], s, 0.0)
    # Interpolate(1, 1): Adj_final = 1 * Adj_new + 1 * Adj
    adj_final = adj_new_sym + adj_ref[...]
    new_ref[...] = adj_new_sym
    final_ref[...] = adj_final

    # normalize_a(Adj_final) applied implicitly (degrees computed once).
    dinv = _dinv_col(adj_final)
    # conv_task = GCNEncoder(F, H, C): the two (N,N) contractions use bf16 MXU
    # operands with f32 accumulation.  Dropout between layers = identity (eval).
    a_bf = adj_final.astype(jnp.bfloat16)
    z = jnp.dot(x_ref[...], w1_ref[...], preferred_element_type=_F32) + b1_ref[...]
    h = dinv * jnp.dot(a_bf, (dinv * z).astype(jnp.bfloat16),
                       preferred_element_type=_F32)
    h = jnp.maximum(h, 0.0)
    z = jnp.dot(h, w2_ref[...], preferred_element_type=_F32) + b2_ref[...]
    out_ref[...] = dinv * jnp.dot(a_bf, (dinv * z).astype(jnp.bfloat16),
                                  preferred_element_type=_F32)


# ---------------------------------------------------------------------------
# wrapper
# ---------------------------------------------------------------------------
def _call(kernel, out_shape, *inputs):
    multi = isinstance(out_shape, tuple)
    outs = out_shape if multi else (out_shape,)
    fn = pl.pallas_call(
        kernel,
        out_shape=out_shape,
        in_specs=[_vmem_spec() for _ in inputs],
        out_specs=tuple(_vmem_spec() for _ in outs) if multi else _vmem_spec(),
        compiler_params=pltpu.CompilerParams(vmem_limit_bytes=32 * 1024 * 1024),
    )
    return fn(*inputs)


def grcn_forward(x, adj, params, K=50):
    # TODO(synk): whole-array-in-VMEM (no grid) is fine for N up to ~1k; for larger N,
    # row-tile with a two-phase grid (degrees pass, then GCN pass) and mark the row
    # axis "parallel" so v7x's two TensorCores split the tiles.
    n, _ = x.shape
    c = params["w2"].shape[1]

    # kernel A: similarity graph S from the graph-GCN embeddings
    s = _call(_embed_similarity_kernel, jax.ShapeDtypeStruct((n, n), _F32),
              adj, x, params["wg1"], params["wg2"])

    # per-row K-th largest value of S — glue in plain JAX (no clean Pallas sort/top-k).
    # TODO(synk): torch.topk keeps exactly K per row; >= threshold may keep extra on ties.
    kth = lax.top_k(s, K)[0][:, K - 1]
    thr_col = kth.reshape(n, 1)
    thr_row = kth.reshape(1, n)

    # lane-dense padding of the task-head output columns (C -> 128)
    w2p = jnp.pad(params["w2"], ((0, 0), (0, _CP - c)))
    b2p = jnp.pad(params["b2"], ((0, 0), (0, _CP - c)))

    # kernel B: sparsify + fuse + normalize + task GCN
    adj_new, adj_final, out_p = _call(
        _sparsify_gcn_kernel,
        (jax.ShapeDtypeStruct((n, n), _F32),
         jax.ShapeDtypeStruct((n, n), _F32),
         jax.ShapeDtypeStruct((n, _CP), _F32)),
        s, thr_col, thr_row, adj, x,
        params["w1"], params["b1"], w2p, b2p)

    return out_p[:, :c], {"new": adj_new, "final": adj_final}


# ---------------------------------------------------------------------------
# parameters (shapes from the module's __init__)
# ---------------------------------------------------------------------------
def init_params(key, num_features, num_hidden, num_classes):
    k1, k2, k3, k4 = jax.random.split(key, 4)
    s1 = 1.0 / jnp.sqrt(jnp.float32(num_features))
    s2 = 1.0 / jnp.sqrt(jnp.float32(num_hidden))
    return {
        # GCNDiagEncoder(2, F): diagonal weights (GCNConv_diag inits to ones)
        "wg1": jnp.ones((1, num_features), jnp.float32),
        "wg2": jnp.ones((1, num_features), jnp.float32),
        # GCNEncoder(F, H, C): two linear layers (weight + bias)
        "w1": jax.random.uniform(k1, (num_features, num_hidden), jnp.float32, -s1, s1),
        "b1": jax.random.uniform(k2, (1, num_hidden), jnp.float32, -s1, s1),
        "w2": jax.random.uniform(k3, (num_hidden, num_classes), jnp.float32, -s2, s2),
        "b2": jax.random.uniform(k4, (1, num_classes), jnp.float32, -s2, s2),
    }


# ---------------------------------------------------------------------------
# pure-JAX reference (f32 end-to-end, for correctness check)
# ---------------------------------------------------------------------------
def grcn_reference(x, adj, params, K=50):
    def sym_norm(a):
        deg = a.sum(1)
        dinv = jnp.where(deg > 0, deg ** -0.5, 0.0)
        return dinv[:, None] * a * dinv[None, :]

    na = sym_norm(adj)
    h = jnp.tanh(na @ (x * params["wg1"]))
    h = na @ (h * params["wg2"])
    h = h / jnp.maximum(jnp.sqrt(jnp.sum(h * h, -1, keepdims=True)), 1e-12)
    half = x.shape[1] // 2
    s = h[:, :half] @ h[:, :half].T + h[:, half:] @ h[:, half:].T
    kth = lax.top_k(s, K)[0][:, K - 1:K]
    new = s * (s >= kth).astype(s.dtype)
    new = new + new.T
    final = new + adj
    fn = sym_norm(final)
    hh = jnp.maximum(fn @ (x @ params["w1"] + params["b1"]), 0.0)
    out = fn @ (hh @ params["w2"] + params["b2"])
    return out, new, final


# ---------------------------------------------------------------------------
if __name__ == "__main__":
    # num_nodes must be >= K (=50, fixed in the module); N=128 keeps (N,N) lane-dense.
    N, F, H, C = 128, 32, 32, 8
    key = jax.random.PRNGKey(0)
    kx, ka, kp = jax.random.split(key, 3)

    x = jax.random.normal(kx, (N, F), jnp.float32)
    bern = (jax.random.uniform(ka, (N, N)) < 0.15).astype(jnp.float32)
    adj = jnp.maximum(bern, bern.T)
    adj = adj * (1.0 - jnp.eye(N, dtype=jnp.float32))   # raw graph, no self loops

    params = init_params(kp, F, H, C)

    out, adjs = grcn_forward(x, adj, params, K=50)
    jax.block_until_ready(out)
    jax.block_until_ready(adjs["new"])
    jax.block_until_ready(adjs["final"])

    ref_out, ref_new, ref_final = grcn_reference(x, adj, params, K=50)
    assert out.shape == (N, C)
    # adjacency outputs are computed fully in f32 -> tight tolerance
    assert jnp.allclose(adjs["new"], ref_new, atol=2e-3, rtol=2e-3), "Adj_new mismatch"
    assert jnp.allclose(adjs["final"], ref_final, atol=2e-3, rtol=2e-3), "Adj_final mismatch"
    # logits use bf16 MXU operands (f32 accumulation) in the task GCN -> looser tolerance
    assert jnp.allclose(out, ref_out, atol=3e-2, rtol=3e-2), "logits mismatch"

    print("KERNEL_OK")
</pallas_src>

<mosaic_0001>
module attributes {stable_mosaic.version = 11 : i64} {
  func.func @_embed_similarity_kernel(%arg0: memref<128x128xf32, #tpu.memory_space<vmem>>, %arg1: memref<128x32xf32, #tpu.memory_space<vmem>>, %arg2: memref<1x32xf32, #tpu.memory_space<vmem>>, %arg3: memref<1x32xf32, #tpu.memory_space<vmem>>, %arg4: memref<128x128xf32, #tpu.memory_space<vmem>>) attributes {dimension_semantics = [], scalar_prefetch = 0 : i64, scratch_operands = 0 : i64, tpu.core_type = #tpu.core_type<tc>} {
    %c0 = arith.constant 0 : index
    %c0_0 = arith.constant 0 : index
    %0 = vector.load %arg0[%c0, %c0_0] : memref<128x128xf32, #tpu.memory_space<vmem>>, vector<128x128xf32>
    %cst = arith.constant dense<0.000000e+00> : vector<128xf32>
    %1 = vector.multi_reduction <add>, %0, %cst [1] : vector<128x128xf32> to vector<128xf32>
    %2 = vector.shape_cast %1 : vector<128xf32> to vector<128x1xf32>
    %cst_1 = arith.constant 0.000000e+00 : f32
    %3 = vector.broadcast %cst_1 : f32 to vector<128x1xf32>
    %4 = arith.cmpf ogt, %2, %3 : vector<128x1xf32>
    %5 = math.rsqrt %2 : vector<128x1xf32>
    %cst_2 = arith.constant 0.000000e+00 : f32
    %6 = vector.broadcast %cst_2 : f32 to vector<128x1xf32>
    %7 = arith.select %4, %5, %6 : vector<128x1xi1>, vector<128x1xf32>
    %c0_3 = arith.constant 0 : index
    %c0_4 = arith.constant 0 : index
    %8 = vector.load %arg1[%c0_3, %c0_4] : memref<128x32xf32, #tpu.memory_space<vmem>>, vector<128x32xf32>
    %c0_5 = arith.constant 0 : index
    %c0_6 = arith.constant 0 : index
    %9 = vector.load %arg2[%c0_5, %c0_6] : memref<1x32xf32, #tpu.memory_space<vmem>>, vector<1x32xf32>
    %10 = vector.broadcast %9 : vector<1x32xf32> to vector<128x32xf32>
    %11 = arith.mulf %8, %10 : vector<128x32xf32>
    %12 = vector.broadcast %7 : vector<128x1xf32> to vector<128x32xf32>
    %13 = arith.mulf %12, %11 : vector<128x32xf32>
    %cst_7 = arith.constant dense<0.000000e+00> : vector<128x32xf32>
    %14 = tpu.matmul %0, %13, %cst_7 {dimension_numbers = #tpu.dot_dimension_numbers<[1], [0], [0], [1], [0, 0, 1, 1], [], []>} : vector<128x128xf32>, vector<128x32xf32>, vector<128x32xf32> -> vector<128x32xf32>
    %15 = vector.broadcast %7 : vector<128x1xf32> to vector<128x32xf32>
    %16 = arith.mulf %15, %14 : vector<128x32xf32>
    %17 = math.tanh %16 : vector<128x32xf32>
    %c0_8 = arith.constant 0 : index
    %c0_9 = arith.constant 0 : index
    %18 = vector.load %arg3[%c0_8, %c0_9] : memref<1x32xf32, #tpu.memory_space<vmem>>, vector<1x32xf32>
    %19 = vector.broadcast %18 : vector<1x32xf32> to vector<128x32xf32>
    %20 = arith.mulf %17, %19 : vector<128x32xf32>
    %21 = vector.broadcast %7 : vector<128x1xf32> to vector<128x32xf32>
    %22 = arith.mulf %21, %20 : vector<128x32xf32>
    %cst_10 = arith.constant dense<0.000000e+00> : vector<128x32xf32>
    %23 = tpu.matmul %0, %22, %cst_10 {dimension_numbers = #tpu.dot_dimension_numbers<[1], [0], [0], [1], [0, 0, 1, 1], [], []>} : vector<128x128xf32>, vector<128x32xf32>, vector<128x32xf32> -> vector<128x32xf32>
    %24 = vector.broadcast %7 : vector<128x1xf32> to vector<128x32xf32>
    %25 = arith.mulf %24, %23 : vector<128x32xf32>
    %26 = arith.mulf %25, %25 : vector<128x32xf32>
    %cst_11 = arith.constant dense<0.000000e+00> : vector<128xf32>
    %27 = vector.multi_reduction <add>, %26, %cst_11 [1] : vector<128x32xf32> to vector<128xf32>
    %28 = vector.shape_cast %27 : vector<128xf32> to vector<128x1xf32>
    %cst_12 = arith.constant 1.000000e-24 : f32
    %29 = vector.broadcast %cst_12 : f32 to vector<128x1xf32>
    %30 = arith.maximumf %28, %29 : vector<128x1xf32>
    %31 = math.rsqrt %30 : vector<128x1xf32>
    %32 = vector.broadcast %31 : vector<128x1xf32> to vector<128x32xf32>
    %33 = arith.mulf %25, %32 : vector<128x32xf32>
    %cst_13 = arith.constant dense<0.000000e+00> : vector<128x128xf32>
    %34 = tpu.matmul %33, %33, %cst_13 {dimension_numbers = #tpu.dot_dimension_numbers<[1], [1], [0], [0], [0, 0, 1, 0], [], []>} : vector<128x32xf32>, vector<128x32xf32>, vector<128x128xf32> -> vector<128x128xf32>
    %c0_14 = arith.constant 0 : index
    %c0_15 = arith.constant 0 : index
    %35 = vector.load %arg4[%c0_14, %c0_15] : memref<128x128xf32, #tpu.memory_space<vmem>>, vector<128x128xf32>
    tpu.vector_store %arg4[%c0_14, %c0_15], %34 {strides = array<i32>} : memref<128x128xf32, #tpu.memory_space<vmem>>, vector<128x128xf32>,
    return
  }
}

</mosaic_0001>

<bundles_post_ra>
// kernel: tpu_custom_call.1
= control target key start
LH: loop header
LB: loop body
LE: loop exit
PB: predicated region body
PF: predicated region fallthrough
CT: control target
= control target key end

     0   :  { %s1871_s0 = inlined_call_operand.vmem [shape: f32[128,128], index: 0, kind: input, shape index: {}]   ;;  %s1872_s1 = inlined_call_operand.vmem [shape: f32[128,32], index: 1, kind: input, shape index: {}]   ;;  %s1873_s2 = inlined_call_operand.vmem [shape: f32[1,32], index: 2, kind: input, shape index: {}]   ;;  %s1874_s3 = inlined_call_operand.vmem [shape: f32[1,32], index: 3, kind: input, shape index: {}]   ;;  %s1875_s4 = inlined_call_operand.hbm [shape: f32[128,128], index: 4, kind: output, shape index: {}]  }
   0x1   :  { %v1334_v0 = vld [vmem:[%s1871_s0 + $0x78] sm:$0xff]  ;;  %v1339_v1 = vld [vmem:[%s1871_s0 + $0x68] sm:$0xff]  ;;  %v1346_v2 = vld [vmem:[%s1871_s0 + $0x70] sm:$0xff] }
   0x2   :  { %64 = vadd.xlane.f32.xlu0 %v1334_v0  ;;  %60 = vadd.xlane.f32.xlu1 %v1339_v1  ;;  %v1351_v3 = vld [vmem:[%s1871_s0 + $0x60] sm:$0xff] }
   0x3   :  { %v1358_v4 = vld [vmem:[%s1871_s0] sm:$0xff] }
   0x6   :  { %62 = vadd.xlane.f32.xlu0 %v1346_v2  ;;  %58 = vadd.xlane.f32.xlu1 %v1351_v3 }
   0x7   :  { %9 = vsyncpa [#allocation3], 0  ;;  %v1363_v5 = vld [vmem:[%s1871_s0 + $0x58] sm:$0xff]  ;;  %v1368_v6 = vld [vmem:[%s1871_s0 + $0x50] sm:$0xff]  ;;  %1046 = vmatprep.mubr.f32.mxu1 %v1358_v4 }
   0x8   :  { %v1376_v7 = vld [vmem:[%s1871_s0 + $0x48] sm:$0xff]  ;;  %v1381_v8 = vld [vmem:[%s1871_s0 + $0x40] sm:$0xff]  ;;  %v1388_v9 = vld [vmem:[%s1871_s0 + $0x38] sm:$0xff] }
   0x9   :  { %v1393_v10 = vld [vmem:[%s1871_s0 + $0x30] sm:$0xff]  ;;  %v1400_v11 = vld [vmem:[%s1871_s0 + $0x28] sm:$0xff]  ;;  %v1405_v12 = vld [vmem:[%s1871_s0 + $0x20] sm:$0xff] }
   0xa   :  { %56 = vadd.xlane.f32.xlu0 %v1363_v5  ;;  %54 = vadd.xlane.f32.xlu1 %v1368_v6  ;;  %v1412_v13 = vld [vmem:[%s1871_s0 + $0x18] sm:$0xff]  ;;  %v1417_v14 = vld [vmem:[%s1871_s0 + $0x10] sm:$0xff]  ;;  %v1424_v15 = vld [vmem:[%s1871_s0 + $0x8] sm:$0xff] }
   0xb   :  { %v129_v22 = vld [vmem:[%s1872_s1 + $0x78] sm:$0xff]  ;;  %v1434_v23 = vld [vmem:[%s1873_s2] ss:$0 sm:$0xff]  ;;  %v128_v27 = vld [vmem:[%s1872_s1 + $0x70] sm:$0xff] }
   0xc   :  { %v152_v26 = vmul.f32 %v1434_v23, %v129_v22  ;;  %v127_v30 = vld [vmem:[%s1872_s1 + $0x68] sm:$0xff]  ;;  %v151_v35 = vmul.f32 %v1434_v23, %v128_v27  ;;  %v126_v36 = vld [vmem:[%s1872_s1 + $0x60] sm:$0xff]  ;;  %v125_v42 = vld [vmem:[%s1872_s1 + $0x58] sm:$0xff] }
   0xd   :  { %v150_v38 = vmul.f32 %v1434_v23, %v127_v30  ;;  %v149_v46 = vmul.f32 %v1434_v23, %v126_v36  ;;  %v124_v48 = vld [vmem:[%s1872_s1 + $0x50] sm:$0xff]  ;;  %v148_v51 = vmul.f32 %v1434_v23, %v125_v42  ;;  %v123_v54 = vld [vmem:[%s1872_s1 + $0x48] sm:$0xff]  ;;  %v122_v60 = vld [vmem:[%s1872_s1 + $0x40] sm:$0xff] }
   0xe   :  { %52 = vadd.xlane.f32.xlu0 %v1376_v7  ;;  %50 = vadd.xlane.f32.xlu1 %v1381_v8  ;;  %v147_v58 = vmul.f32 %v1434_v23, %v124_v48  ;;  %v146_v63 = vmul.f32 %v1434_v23, %v123_v54  ;;  %v145_v22 = vmul.f32 %v1434_v23, %v122_v60 }
  0x12   :  { %48 = vadd.xlane.f32.xlu0 %v1388_v9  ;;  %46 = vadd.xlane.f32.xlu1 %v1393_v10 }
  0x16   :  { %44 = vadd.xlane.f32.xlu0 %v1400_v11  ;;  %42 = vadd.xlane.f32.xlu1 %v1405_v12 }
  0x1a   :  { %40 = vadd.xlane.f32.xlu0 %v1412_v13  ;;  %38 = vadd.xlane.f32.xlu1 %v1417_v14 }
  0x1e   :  { %36 = vadd.xlane.f32.xlu0 %v1424_v15  ;;  %34 = vadd.xlane.f32.xlu1 %v1358_v4 }
  0x8b   :  { %v65_v16 = vpop.xlane.xlu0 %64  ;;  %v61_v17 = vpop.xlane.xlu1 %60 }
  0x8c   :  { %1185 = vrsqrt.f32 %v65_v16  ;;  %vm81_vm0 = vcmp.gt.f32.partialorder %v65_v16, 0.0  ;;  %vm79_vm1 = vcmp.gt.f32.partialorder %v61_v17, 0.0 }
  0x8d   :  { %1187 = vrsqrt.f32 %v61_v17 }
  0x8f   :  { %v63_v18 = vpop.xlane.xlu0 %62  ;;  %v59_v19 = vpop.xlane.xlu1 %58 }
  0x90   :  { %1189 = vrsqrt.f32 %v63_v18  ;;  %vm80_vm2 = vcmp.gt.f32.partialorder %v63_v18, 0.0  ;;  %vm78_vm3 = vcmp.gt.f32.partialorder %v59_v19, 0.0  ;;  %v121_v18 = vld [vmem:[%s1872_s1 + $0x38] sm:$0xff] }
  0x91   :  { %1191 = vrsqrt.f32 %v59_v19 }
  0x93   :  { %v57_v20 = vpop.xlane.xlu0 %56  ;;  %v55_v21 = vpop.xlane.xlu1 %54 }
  0x94   :  { %1193 = vrsqrt.f32 %v57_v20  ;;  %vm77_vm4 = vcmp.gt.f32.partialorder %v57_v20, 0.0  ;;  %vm76_vm5 = vcmp.gt.f32.partialorder %v55_v21, 0.0 }
  0x95   :  { %1195 = vrsqrt.f32 %v55_v21 }
  0x97   :  { %v1436_v24 = vpop.xlane.xlu0 %52  ;;  %v1438_v25 = vpop.xlane.xlu1 %50 }
  0x98   :  { %1197 = vrsqrt.f32 %v1436_v24  ;;  %vm75_vm6 = vcmp.gt.f32.partialorder %v1436_v24, 0.0  ;;  %vm74_vm7 = vcmp.gt.f32.partialorder %v1438_v25, 0.0 }
  0x99   :  { %v1186_v28 = vpop.eup %1185  ;;  %1199 = vrsqrt.f32 %v1438_v25 }
  0x9a   :  { %v1446_v29 = vsel %vm81_vm0, %v1186_v28, 0.0  ;;  %v1188_v31 = vpop.eup %1187  ;;  %v144_v28 = vmul.f32 %v1434_v23, %v121_v18  ;;  %vm562_vm0 = vcmask 261120  }
  0x9b   :  { %v1451_v32 = vpop.xlane.xlu0 %48  ;;  %v1453_v33 = vpop.xlane.xlu1 %46  ;;  %v168_v34 = vmul.f32 %v152_v26, %v1446_v29  ;;  %v1463_v40 = vsel %vm79_vm1, %v1188_v31, 0.0  ;;  %v120_v26 = vld [vmem:[%s1872_s1 + $0x30] sm:$0xff] }
  0x9c   :  { %1201 = vrsqrt.f32 %v1451_v32  ;;  %v166_v50 = vmul.f32 %v150_v38, %v1463_v40  ;;  %vm73_vm8 = vcmp.gt.f32.partialorder %v1451_v32, 0.0  ;;  %vm72_vm9 = vcmp.gt.f32.partialorder %v1453_v33, 0.0 }
  0x9d   :  { %v1190_v37 = vpop.eup %1189  ;;  %1203 = vrsqrt.f32 %v1453_v33  ;;  %1014 = vmatprep.subr.mxu1 %v168_v34 }
  0x9e   :  { %v1192_v39 = vpop.eup %1191  ;;  %v1465_v41 = vsel %vm80_vm2, %v1190_v37, 0.0  ;;  %1015 = vmatpush3.msra.mxu1 %v168_v34  ;;  %v119_v34 = vld [vmem:[%s1872_s1 + $0x28] sm:$0xff]  ;;  %v118_v37 = vld [vmem:[%s1872_s1 + $0x20] sm:$0xff] }
  0x9f   :  { %v1470_v43 = vpop.xlane.xlu0 %44  ;;  %v1472_v44 = vpop.xlane.xlu1 %42  ;;  %v167_v45 = vmul.f32 %v151_v35, %v1465_v41  ;;  %v1476_v47 = vsel %vm78_vm3, %v1192_v39, 0.0  ;;  %v143_v35 = vmul.f32 %v1434_v23, %v120_v26  ;;  %v142_v33 = vmul.f32 %v1434_v23, %v119_v34 }
  0xa0   :  { %1205 = vrsqrt.f32 %v1470_v43  ;;  %v165_v57 = vmul.f32 %v149_v46, %v1476_v47  ;;  %vm71_vm10 = vcmp.gt.f32.partialorder %v1470_v43, 0.0  ;;  %v117_v46 = vld [vmem:[%s1872_s1 + $0x18] sm:$0xff]  ;;  %vm70_vm11 = vcmp.gt.f32.partialorder %v1472_v44, 0.0 }
  0xa1   :  { %v1194_v49 = vpop.eup %1193  ;;  %1207 = vrsqrt.f32 %v1472_v44  ;;  %1016 = vmatprep.subr.mxu1 %v167_v45  ;;  %v141_v43 = vmul.f32 %v1434_v23, %v118_v37  ;;  %v140_v44 = vmul.f32 %v1434_v23, %v117_v46 }
  0xa2   :  { %v1196_v52 = vpop.eup %1195  ;;  %v1485_v53 = vsel %vm77_vm4, %v1194_v49, 0.0  ;;  %1017 = vmatpush3.msra.mxu1 %v167_v45 }
  0xa3   :  { %1018 = vmatprep.subr.mxu1 %v166_v50  ;;  %v1490_v55 = vpop.xlane.xlu0 %40  ;;  %v1492_v56 = vpop.xlane.xlu1 %38  ;;  %v1496_v59 = vsel %vm76_vm5, %v1196_v52, 0.0  ;;  %v164_v62 = vmul.f32 %v148_v51, %v1485_v53 }
  0xa4   :  { %1209 = vrsqrt.f32 %v1490_v55  ;;  %1019 = vmatpush3.msra.mxu1 %v166_v50  ;;  %v163_v21 = vmul.f32 %v147_v58, %v1496_v59  ;;  %v116_v50 = vld [vmem:[%s1872_s1 + $0x10] sm:$0xff]  ;;  %vm69_vm12 = vcmp.gt.f32.partialorder %v1490_v55, 0.0  ;;  %v115_v58 = vld [vmem:[%s1872_s1 + $0x8] sm:$0xff]  ;;  %vm68_vm13 = vcmp.gt.f32.partialorder %v1492_v56, 0.0 }
  0xa5   :  { %v1198_v61 = vpop.eup %1197  ;;  %1211 = vrsqrt.f32 %v1492_v56  ;;  %1020 = vmatprep.subr.mxu1 %v165_v57  ;;  %v139_v55 = vmul.f32 %v1434_v23, %v116_v50  ;;  %v138_v56 = vmul.f32 %v1434_v23, %v115_v58 }
  0xa6   :  { %v1200_v16 = vpop.eup %1199  ;;  %v1506_v17 = vsel %vm75_vm6, %v1198_v61, 0.0  ;;  %1021 = vmatpush3.msra.mxu1 %v165_v57 }
  0xa7   :  { %1022 = vmatprep.subr.mxu1 %v164_v62  ;;  %v1512_v19 = vpop.xlane.xlu0 %36  ;;  %v1514_v20 = vpop.xlane.xlu1 %34  ;;  %v1518_v24 = vsel %vm74_vm7, %v1200_v16, 0.0  ;;  %v162_v25 = vmul.f32 %v146_v63, %v1506_v17 }
  0xa8   :  { %1213 = vrsqrt.f32 %v1512_v19  ;;  %1023 = vmatpush3.msra.mxu1 %v164_v62  ;;  %v161_v32 = vmul.f32 %v145_v22, %v1518_v24  ;;  %v114_v62 = vld [vmem:[%s1872_s1] sm:$0xff]  ;;  %vm67_vm14 = vcmp.gt.f32.partialorder %v1512_v19, 0.0  ;;  %vm66_vm15 = vcmp.gt.f32.partialorder %v1514_v20, 0.0 }
  0xa9   :  { %v1202_v27 = vpop.eup %1201  ;;  %1215 = vrsqrt.f32 %v1514_v20  ;;  %1024 = vmatprep.subr.mxu1 %v163_v21  ;;  %v137_v26 = vmul.f32 %v1434_v23, %v114_v62 }
  0xaa   :  { %v1204_v30 = vpop.eup %1203  ;;  %v1528_v31 = vsel %vm73_vm8, %v1202_v27, 0.0  ;;  %1025 = vmatpush3.msra.mxu1 %v163_v21 }
  0xab   :  { %1026 = vmatprep.subr.mxu1 %v162_v25  ;;  %v1536_v36 = vsel %vm72_vm9, %v1204_v30, 0.0  ;;  %v160_v39 = vmul.f32 %v144_v28, %v1528_v31 }
  0xac   :  { %1027 = vmatpush3.msra.mxu1 %v162_v25  ;;  %v159_v48 = vmul.f32 %v143_v35, %v1536_v36 }
  0xad   :  { %v1206_v38 = vpop.eup %1205  ;;  %1028 = vmatprep.subr.mxu1 %v161_v32 }
  0xae   :  { %v1208_v42 = vpop.eup %1207  ;;  %v1544_v45 = vsel %vm71_vm10, %v1206_v38, 0.0  ;;  %1029 = vmatpush3.msra.mxu1 %v161_v32 }
  0xaf   :  { %1030 = vmatprep.subr.mxu1 %v160_v39  ;;  %v1552_v49 = vsel %vm70_vm11, %v1208_v42, 0.0  ;;  %v158_v52 = vmul.f32 %v142_v33, %v1544_v45 }
  0xb0   :  { %1031 = vmatpush3.msra.mxu1 %v160_v39  ;;  %v157_v60 = vmul.f32 %v141_v43, %v1552_v49 }
  0xb1   :  { %v1210_v51 = vpop.eup %1209  ;;  %1032 = vmatprep.subr.mxu1 %v159_v48 }
  0xb2   :  { %v1212_v54 = vpop.eup %1211  ;;  %v1560_v57 = vsel %vm69_vm12, %v1210_v51, 0.0  ;;  %1033 = vmatpush3.msra.mxu1 %v159_v48 }
  0xb3   :  { %1034 = vmatprep.subr.mxu1 %v158_v52  ;;  %v1568_v61 = vsel %vm68_vm13, %v1212_v54, 0.0  ;;  %v156_v16 = vmul.f32 %v140_v44, %v1560_v57 }
  0xb4   :  { %1035 = vmatpush3.msra.mxu1 %v158_v52  ;;  %v155_v22 = vmul.f32 %v139_v55, %v1568_v61 }
  0xb5   :  { %v1214_v63 = vpop.eup %1213  ;;  %1036 = vmatprep.subr.mxu1 %v157_v60 }
  0xb6   :  { %v1216_v18 = vpop.eup %1215  ;;  %v1576_v21 = vsel %vm67_vm14, %v1214_v63, 0.0  ;;  %1037 = vmatpush3.msra.mxu1 %v157_v60 }
  0xb7   :  { %1038 = vmatprep.subr.mxu1 %v156_v16  ;;  %v1581_v27 = vsel %vm66_vm15, %v1216_v18, 0.0  ;;  %v154_v19 = vmul.f32 %v138_v56, %v1576_v21 }
  0xb8   :  { %1039 = vmatpush3.msra.mxu1 %v156_v16  ;;  %v153_v25 = vmul.f32 %v137_v26, %v1581_v27 }
  0xb9   :  { %1040 = vmatprep.subr.mxu1 %v155_v22 }
  0xba   :  { %1041 = vmatpush3.msra.mxu1 %v155_v22  ;;  %v1617_v22 = vld [vmem:[%s1874_s3] ss:$0 sm:$0xff]  ;;  %s1303_s3 = smov [#allocation2]  }
  0xbb   :  { %1042 = vmatprep.subr.mxu1 %v154_v19  ;;  %s873_s26 = sshll.u32 %s1303_s3, 4  ;;  %s874_s26 = int_to_ptr.vmem [resolvable:$true] %s873_s26 }
  0xbc   :  { %1043 = vmatpush3.msra.mxu1 %v154_v19  ;;  %s1281_s27 = scalar_lea.vmem %s874_s26, 2048  ;;  %p1286_p1 = scmp.lt.s32.totalorder %s874_s26, %s874_s26 }
  0xbd   :  { %1044 = vmatprep.subr.mxu1 %v153_v25  ;;  %p1282_p0 = scmp.ne.s32.totalorder %s874_s26, %s1281_s27  ;;  %p1287_p2 = scmp.lt.s32.totalorder %s1281_s27, %s1281_s27 }
  0xbe   :  { %1045 = vmatpush3.msra.mxu1 %v153_v25 }
  0xbf   :  { %1047 = vmatmul.mubr.f32.vlgmr.msra.gmra.mxu1 %v1424_v15  ;;  %p1288_p3 = por %p1287_p2, %p1286_p1 }
  0xc0   :  { %1049 = vmatprep.mubr.f32.mxu1 %v1417_v14 }
  0xc1   :  { %p1289_p4 = pnand %p1288_p3, %p1282_p0 }
  0xc3   :  { %1050 = vmatmul.mubr.f32.gmra.mxu1 %v1412_v13 }
  0xc4   :  { %1052 = vmatprep.mubr.f32.mxu1 %v1405_v12 }
  0xc7   :  { %1053 = vmatmul.mubr.f32.gmra.mxu1 %v1400_v11 }
  0xc8   :  { %1055 = vmatprep.mubr.f32.mxu1 %v1393_v10 }
  0xcb   :  { %1056 = vmatmul.mubr.f32.gmra.mxu1 %v1388_v9 }
  0xcc   :  { %1058 = vmatprep.mubr.f32.mxu1 %v1381_v8 }
  0xcf   :  { %1059 = vmatmul.mubr.f32.gmra.mxu1 %v1376_v7 }
  0xd0   :  { %1061 = vmatprep.mubr.f32.mxu1 %v1368_v6 }
  0xd3   :  { %1062 = vmatmul.mubr.f32.gmra.mxu1 %v1363_v5 }
  0xd4   :  { %1064 = vmatprep.mubr.f32.mxu1 %v1351_v3 }
  0xd7   :  { %1065 = vmatmul.mubr.f32.gmra.mxu1 %v1339_v1 }
  0xd8   :  { %1067 = vmatprep.mubr.f32.mxu1 %v1346_v2 }
  0xdb   :  { %1068 = vmatmul.mubr.f32.gmra.mxu1 %v1334_v0 }
  0xdc   :  { %1102 = vmatprep.mubr.f32.mxu1 %v1358_v4 }
 0x17f   :  { %v1048_v23 = vpop.f32.mrf.mxu1 }
 0x181   :  { %v1601_v20 = vpop.f32.mrf.mxu1 }
 0x183   :  { %v1051_v28 = vpop.f32.mrf.mxu1 }
 0x185   :  { %v245_v30 = vpop.f32.mrf.mxu1 }
 0x187   :  { %v1054_v34 = vpop.f32.mrf.mxu1 }
 0x188   :  { %v319_v56 = vmul.f32 %v1054_v34, %v1544_v45 }
 0x189   :  { %v255_v32 = vpop.f32.mrf.mxu1 }
 0x18a   :  { %v318_v19 = vmul.f32 %v255_v32, %v1552_v49 }
 0x18b   :  { %v1057_v35 = vpop.f32.mrf.mxu1 }
 0x18c   :  { %v321_v62 = vmul.f32 %v1057_v35, %v1528_v31 }
 0x18d   :  { %v265_v37 = vpop.f32.mrf.mxu1 }
 0x18e   :  { %v320_v63 = vmul.f32 %v265_v37, %v1536_v36  ;;  %v317_v37 = vmul.f32 %v1051_v28, %v1560_v57  ;;  %v315_v28 = vmul.f32 %v1048_v23, %v1576_v21 }
 0x18f   :  { %v1060_v38 = vpop.f32.mrf.mxu1 }
 0x190   :  { %v323_v60 = vmul.f32 %v1060_v38, %v1506_v17 }
 0x191   :  { %v275_v39 = vpop.f32.mrf.mxu1 }
 0x192   :  { %v322_v55 = vmul.f32 %v275_v39, %v1518_v24 }
 0x193   :  { %v1063_v33 = vpop.f32.mrf.mxu1 }
 0x194   :  { %v325_v44 = vmul.f32 %v1063_v33, %v1485_v53 }
 0x195   :  { %v285_v42 = vpop.f32.mrf.mxu1 }
 0x196   :  { %v324_v58 = vmul.f32 %v285_v42, %v1496_v59  ;;  %v316_v42 = vmul.f32 %v245_v30, %v1568_v61  ;;  %v314_v30 = vmul.f32 %v1601_v20, %v1581_v27 }
 0x197   :  { %v1066_v46 = vpop.f32.mrf.mxu1 }
 0x198   :  { %v327_v48 = vmul.f32 %v1066_v46, %v1463_v40 }
 0x199   :  { %v295_v43 = vpop.f32.mrf.mxu1 }
 0x19a   :  { %v326_v50 = vmul.f32 %v295_v43, %v1476_v47  ;;  %1217 = vtanh.f32 %v327_v48 }
 0x19b   :  { %v1069_v4 = vpop.f32.mrf.mxu1 }
 0x19c   :  { %v329_v51 = vmul.f32 %v1069_v4, %v1446_v29 }
 0x19d   :  { %v305_v52 = vpop.f32.mrf.mxu1 }
 0x19e   :  { %1219 = vtanh.f32 %v329_v51  ;;  %v328_v54 = vmul.f32 %v305_v52, %v1465_v41 }
 0x19f   :  { %1221 = vtanh.f32 %v326_v50 }
 0x1a0   :  { %1223 = vtanh.f32 %v328_v54 }
 0x1a1   :  { %1225 = vtanh.f32 %v325_v44 }
 0x1a2   :  { %1227 = vtanh.f32 %v324_v58 }
 0x1a3   :  { %1229 = vtanh.f32 %v323_v60 }
 0x1a4   :  { %1231 = vtanh.f32 %v322_v55 }
 0x1a5   :  { %1233 = vtanh.f32 %v321_v62 }
 0x1a6   :  { %1235 = vtanh.f32 %v320_v63 }
 0x1a7   :  { %v1218_v16 = vpop.eup %1217  ;;  %1237 = vtanh.f32 %v319_v56 }
 0x1a8   :  { %v366_v39 = vmul.f32 %v1218_v16, %v1617_v22  ;;  %1239 = vtanh.f32 %v318_v19 }
 0x1a9   :  { %1241 = vtanh.f32 %v317_v37 }
 0x1aa   :  { %v382_v43 = vmul.f32 %v366_v39, %v1463_v40  ;;  %1243 = vtanh.f32 %v316_v42 }
 0x1ab   :  { %v1220_v18 = vpop.eup %1219  ;;  %1245 = vtanh.f32 %v315_v28 }
 0x1ac   :  { %v1222_v26 = vpop.eup %1221  ;;  %v368_v25 = vmul.f32 %v1220_v18, %v1617_v22  ;;  %1247 = vtanh.f32 %v314_v30 }
 0x1ad   :  { %v1224_v35 = vpop.eup %1223  ;;  %v365_v46 = vmul.f32 %v1222_v26, %v1617_v22 }
 0x1ae   :  { %v384_v38 = vmul.f32 %v368_v25, %v1446_v29  ;;  %v367_v34 = vmul.f32 %v1224_v35, %v1617_v22  ;;  %v1226_v33 = vpop.eup %1225 }
 0x1af   :  { %v1228_v48 = vpop.eup %1227  ;;  %v364_v50 = vmul.f32 %v1226_v33, %v1617_v22  ;;  %v381_v51 = vmul.f32 %v365_v46, %v1476_v47 }
 0x1b0   :  { %1070 = vmatprep.subr.mxu1 %v384_v38  ;;  %v383_v32 = vmul.f32 %v367_v34, %v1465_v41  ;;  %v1230_v4 = vpop.eup %1229  ;;  %v363_v52 = vmul.f32 %v1228_v48, %v1617_v22 }
 0x1b1   :  { %1071 = vmatpush3.msra.mxu1 %v384_v38  ;;  %v1232_v44 = vpop.eup %1231  ;;  %v380_v23 = vmul.f32 %v364_v50, %v1485_v53  ;;  %v362_v54 = vmul.f32 %v1230_v4, %v1617_v22 }
 0x1b2   :  { %1072 = vmatprep.subr.mxu1 %v383_v32  ;;  %v1234_v58 = vpop.eup %1233  ;;  %v379_v20 = vmul.f32 %v363_v52, %v1496_v59  ;;  %v361_v60 = vmul.f32 %v1232_v44, %v1617_v22 }
 0x1b3   :  { %1073 = vmatpush3.msra.mxu1 %v383_v32  ;;  %v1236_v55 = vpop.eup %1235  ;;  %v378_v62 = vmul.f32 %v362_v54, %v1506_v17  ;;  %v360_v63 = vmul.f32 %v1234_v58, %v1617_v22 }
 0x1b4   :  { %1074 = vmatprep.subr.mxu1 %v382_v43  ;;  %v1238_v16 = vpop.eup %1237  ;;  %v377_v56 = vmul.f32 %v361_v60, %v1518_v24  ;;  %v359_v18 = vmul.f32 %v1236_v55, %v1617_v22 }
 0x1b5   :  { %1075 = vmatpush3.msra.mxu1 %v382_v43  ;;  %v1240_v26 = vpop.eup %1239  ;;  %v376_v19 = vmul.f32 %v360_v63, %v1528_v31  ;;  %v358_v25 = vmul.f32 %v1238_v16, %v1617_v22 }
 0x1b6   :  { %1076 = vmatprep.subr.mxu1 %v381_v51  ;;  %v1242_v35 = vpop.eup %1241  ;;  %v375_v37 = vmul.f32 %v359_v18, %v1536_v36  ;;  %v357_v38 = vmul.f32 %v1240_v26, %v1617_v22 }
 0x1b7   :  { %1077 = vmatpush3.msra.mxu1 %v381_v51  ;;  %v1244_v34 = vpop.eup %1243  ;;  %v374_v39 = vmul.f32 %v358_v25, %v1544_v45  ;;  %v356_v33 = vmul.f32 %v1242_v35, %v1617_v22 }
 0x1b8   :  { %1078 = vmatprep.subr.mxu1 %v380_v23  ;;  %v1246_v42 = vpop.eup %1245  ;;  %v373_v32 = vmul.f32 %v357_v38, %v1552_v49  ;;  %v355_v46 = vmul.f32 %v1244_v34, %v1617_v22 }
 0x1b9   :  { %1079 = vmatpush3.msra.mxu1 %v380_v23  ;;  %v1248_v48 = vpop.eup %1247  ;;  %v372_v28 = vmul.f32 %v356_v33, %v1560_v57  ;;  %v354_v43 = vmul.f32 %v1246_v42, %v1617_v22 }
 0x1ba   :  { %1080 = vmatprep.subr.mxu1 %v379_v20  ;;  %v371_v50 = vmul.f32 %v355_v46, %v1568_v61  ;;  %v353_v4 = vmul.f32 %v1248_v48, %v1617_v22 }
 0x1bb   :  { %1081 = vmatpush3.msra.mxu1 %v379_v20  ;;  %v370_v30 = vmul.f32 %v354_v43, %v1576_v21 }
 0x1bc   :  { %1082 = vmatprep.subr.mxu1 %v378_v62  ;;  %v369_v51 = vmul.f32 %v353_v4, %v1581_v27 }
 0x1bd   :  { %1083 = vmatpush3.msra.mxu1 %v378_v62 }
 0x1be   :  { %1084 = vmatprep.subr.mxu1 %v377_v56 }
 0x1bf   :  { %1085 = vmatpush3.msra.mxu1 %v377_v56 }
 0x1c0   :  { %1086 = vmatprep.subr.mxu1 %v376_v19 }
 0x1c1   :  { %1087 = vmatpush3.msra.mxu1 %v376_v19 }
 0x1c2   :  { %1088 = vmatprep.subr.mxu1 %v375_v37 }
 0x1c3   :  { %1089 = vmatpush3.msra.mxu1 %v375_v37 }
 0x1c4   :  { %1090 = vmatprep.subr.mxu1 %v374_v39 }
 0x1c5   :  { %1091 = vmatpush3.msra.mxu1 %v374_v39 }
 0x1c6   :  { %1092 = vmatprep.subr.mxu1 %v373_v32 }
 0x1c7   :  { %1093 = vmatpush3.msra.mxu1 %v373_v32 }
 0x1c8   :  { %1094 = vmatprep.subr.mxu1 %v372_v28 }
 0x1c9   :  { %1095 = vmatpush3.msra.mxu1 %v372_v28 }
 0x1ca   :  { %1096 = vmatprep.subr.mxu1 %v371_v50 }
 0x1cb   :  { %1097 = vmatpush3.msra.mxu1 %v371_v50 }
 0x1cc   :  { %1098 = vmatprep.subr.mxu1 %v370_v30 }
 0x1cd   :  { %1099 = vmatpush3.msra.mxu1 %v370_v30 }
 0x1ce   :  { %1100 = vmatprep.subr.mxu1 %v369_v51 }
 0x1cf   :  { %1101 = vmatpush3.msra.mxu1 %v369_v51 }
 0x1d0   :  { %1103 = vmatmul.mubr.f32.vlgmr.msra.gmra.mxu1 %v1424_v15 }
 0x1d1   :  { %1105 = vmatprep.mubr.f32.mxu1 %v1417_v14 }
 0x1d4   :  { %1106 = vmatmul.mubr.f32.gmra.mxu1 %v1412_v13 }
 0x1d5   :  { %1108 = vmatprep.mubr.f32.mxu1 %v1405_v12 }
 0x1d8   :  { %1109 = vmatmul.mubr.f32.gmra.mxu1 %v1400_v11 }
 0x1d9   :  { %1111 = vmatprep.mubr.f32.mxu1 %v1393_v10 }
 0x1dc   :  { %1112 = vmatmul.mubr.f32.gmra.mxu1 %v1388_v9 }
 0x1dd   :  { %1114 = vmatprep.mubr.f32.mxu1 %v1381_v8 }
 0x1e0   :  { %1115 = vmatmul.mubr.f32.gmra.mxu1 %v1376_v7 }
 0x1e1   :  { %1117 = vmatprep.mubr.f32.mxu1 %v1368_v6 }
 0x1e4   :  { %1118 = vmatmul.mubr.f32.gmra.mxu1 %v1363_v5 }
 0x1e5   :  { %1120 = vmatprep.mubr.f32.mxu1 %v1351_v3 }
 0x1e8   :  { %1121 = vmatmul.mubr.f32.gmra.mxu1 %v1339_v1 }
 0x1e9   :  { %1123 = vmatprep.mubr.f32.mxu1 %v1346_v2 }
 0x1ec   :  { %1124 = vmatmul.mubr.f32.gmra.mxu1 %v1334_v0 }
 0x290   :  { %v1672_v11 = vpop.f32.mrf.mxu1 }
 0x291   :  { %v1754_v46 = vmul.f32 %v1672_v11, %v1576_v21 }
 0x292   :  { %v1674_v10 = vpop.f32.mrf.mxu1 }
 0x293   :  { %v547_v21 = vmul.f32 %v1754_v46, %v1754_v46 }
 0x294   :  { %v1107_v9 = vpop.f32.mrf.mxu1 }
 0x295   :  { %v1741_v39 = vmul.f32 %v1107_v9, %v1560_v57 }
 0x296   :  { %v461_v8 = vpop.f32.mrf.mxu1 }
 0x297   :  { %v1747_v42 = vmul.f32 %v461_v8, %v1568_v61  ;;  %v549_v48 = vmul.f32 %v1741_v39, %v1741_v39  ;;  %v1761_v61 = vmul.f32 %v1674_v10, %v1581_v27  ;;  %v566_v27 = vsel %vm562_vm0, %v547_v21, 0.0 }
 0x298   :  { %v1110_v12 = vpop.f32.mrf.mxu1 }
 0x299   :  { %v1729_v35 = vmul.f32 %v1110_v12, %v1544_v45  ;;  %v548_v43 = vmul.f32 %v1747_v42, %v1747_v42  ;;  %v572_v50 = vsel %vm562_vm0, %v549_v48, 0.0  ;;  %v546_v30 = vmul.f32 %v1761_v61, %v1761_v61 }
 0x29a   :  { %v471_v7 = vpop.f32.mrf.mxu1 }
 0x29b   :  { %v1735_v38 = vmul.f32 %v471_v7, %v1552_v49  ;;  %v551_v33 = vmul.f32 %v1729_v35, %v1729_v35  ;;  %v569_v4 = vsel %vm562_vm0, %v548_v43, 0.0  ;;  %v563_v51 = vsel %vm562_vm0, %v546_v30, 0.0 }
 0x29c   :  { %v1113_v13 = vpop.f32.mrf.mxu1 }
 0x29d   :  { %v1717_v18 = vmul.f32 %v1113_v13, %v1528_v31  ;;  %v550_v32 = vmul.f32 %v1735_v38, %v1735_v38  ;;  %v578_v57 = vsel %vm562_vm0, %v551_v33, 0.0 }
 0x29e   :  { %v481_v6 = vpop.f32.mrf.mxu1 }
 0x29f   :  { %v1723_v19 = vmul.f32 %v481_v6, %v1536_v36  ;;  %v553_v37 = vmul.f32 %v1717_v18, %v1717_v18  ;;  %v575_v28 = vsel %vm562_vm0, %v550_v32, 0.0 }
 0x2a0   :  { %v1116_v14 = vpop.f32.mrf.mxu1 }
 0x2a1   :  { %v552_v34 = vmul.f32 %v1723_v19, %v1723_v19  ;;  %v584_v45 = vsel %vm562_vm0, %v553_v37, 0.0 }
 0x2a2   :  { %v491_v5 = vpop.f32.mrf.mxu1 }
 0x2a3   :  { %v1711_v16 = vmul.f32 %v491_v5, %v1518_v24  ;;  %v581_v49 = vsel %vm562_vm0, %v552_v34, 0.0 }
 0x2a4   :  { %v1119_v15 = vpop.f32.mrf.mxu1 }
 0x2a5   :  { %v1691_v20 = vmul.f32 %v1119_v15, %v1485_v53  ;;  %v1705_v53 = vmul.f32 %v1116_v14, %v1506_v17  ;;  %v554_v25 = vmul.f32 %v1711_v16, %v1711_v16 }
 0x2a6   :  { %v501_v3 = vpop.f32.mrf.mxu1 }
 0x2a7   :  { %v557_v63 = vmul.f32 %v1691_v20, %v1691_v20  ;;  %v555_v26 = vmul.f32 %v1705_v53, %v1705_v53  ;;  %v587_v36 = vsel %vm562_vm0, %v554_v25, 0.0 }
 0x2a8   :  { %v1122_v22 = vpop.f32.mrf.mxu1 }
 0x2a9   :  { %v1677_v2 = vmul.f32 %v1122_v22, %v1463_v40  ;;  %v596_v17 = vsel %vm562_vm0, %v557_v63, 0.0  ;;  %v590_v31 = vsel %vm562_vm0, %v555_v26, 0.0 }
 0x2aa   :  { %v511_v1 = vpop.f32.mrf.mxu1 }
 0x2ab   :  { %v1683_v23 = vmul.f32 %v511_v1, %v1476_v47  ;;  %v559_v60 = vmul.f32 %v1677_v2, %v1677_v2  ;;  %v1699_v47 = vmul.f32 %v501_v3, %v1496_v59 }
 0x2ac   :  { %v1125_v52 = vpop.f32.mrf.mxu1 }
 0x2ad   :  { %v1680_v0 = vmul.f32 %v1125_v52, %v1446_v29  ;;  %v558_v55 = vmul.f32 %v1683_v23, %v1683_v23  ;;  %v602_v62 = vsel %vm562_vm0, %v559_v60, 0.0  ;;  %v556_v56 = vmul.f32 %v1699_v47, %v1699_v47 }
 0x2ae   :  { %v521_v44 = vpop.f32.mrf.mxu1 }
 0x2af   :  { %v1686_v54 = vmul.f32 %v521_v44, %v1465_v41  ;;  %v561_v58 = vmul.f32 %v1680_v0, %v1680_v0  ;;  %v599_v59 = vsel %vm562_vm0, %v558_v55, 0.0  ;;  %v593_v24 = vsel %vm562_vm0, %v556_v56, 0.0 }
 0x2b1   :  { %v608_v40 = vsel %vm562_vm0, %v561_v58, 0.0  ;;  %v560_v29 = vmul.f32 %v1686_v54, %v1686_v54 }
 0x2b2   :  { %609 = vadd.xlane.f32.xlu0 %v608_v40 }
 0x2b3   :  { %v605_v41 = vsel %vm562_vm0, %v560_v29, 0.0 }
 0x2b4   :  { %606 = vadd.xlane.f32.xlu1 %v605_v41 }
 0x2b6   :  { %603 = vadd.xlane.f32.xlu0 %v602_v62 }
 0x2b8   :  { %600 = vadd.xlane.f32.xlu1 %v599_v59 }
 0x2ba   :  { %597 = vadd.xlane.f32.xlu0 %v596_v17 }
 0x2bc   :  { %594 = vadd.xlane.f32.xlu1 %v593_v24 }
 0x2be   :  { %591 = vadd.xlane.f32.xlu0 %v590_v31 }
 0x2c0   :  { %588 = vadd.xlane.f32.xlu1 %v587_v36 }
 0x2c2   :  { %585 = vadd.xlane.f32.xlu0 %v584_v45 }
 0x2c4   :  { %582 = vadd.xlane.f32.xlu1 %v581_v49 }
 0x2c6   :  { %579 = vadd.xlane.f32.xlu0 %v578_v57 }
 0x2c8   :  { %576 = vadd.xlane.f32.xlu1 %v575_v28 }
 0x2ca   :  { %573 = vadd.xlane.f32.xlu0 %v572_v50 }
 0x2cc   :  { %570 = vadd.xlane.f32.xlu1 %v569_v4 }
 0x2ce   :  { %567 = vadd.xlane.f32.xlu0 %v566_v27 }
 0x2d0   :  { %564 = vadd.xlane.f32.xlu1 %v563_v51 }
 0x33b   :  { %v610_v11 = vpop.xlane.xlu0 %609 }
 0x33c   :  { %v626_v10 = vmax.f32 %v610_v11, 1e-24 }
 0x33d   :  { %v607_v9 = vpop.xlane.xlu1 %606 }
 0x33e   :  { %1249 = vrsqrt.f32 %v626_v10  ;;  %v625_v8 = vmax.f32 %v607_v9, 1e-24 }
 0x33f   :  { %v604_v12 = vpop.xlane.xlu0 %603 }
 0x340   :  { %1251 = vrsqrt.f32 %v625_v8  ;;  %v624_v7 = vmax.f32 %v604_v12, 1e-24 }
 0x341   :  { %v601_v13 = vpop.xlane.xlu1 %600 }
 0x342   :  { %1253 = vrsqrt.f32 %v624_v7  ;;  %v623_v6 = vmax.f32 %v601_v13, 1e-24 }
 0x343   :  { %v598_v14 = vpop.xlane.xlu0 %597 }
 0x344   :  { %1255 = vrsqrt.f32 %v623_v6  ;;  %v622_v15 = vmax.f32 %v598_v14, 1e-24 }
 0x345   :  { %v595_v5 = vpop.xlane.xlu1 %594 }
 0x346   :  { %1257 = vrsqrt.f32 %v622_v15  ;;  %v621_v22 = vmax.f32 %v595_v5, 1e-24 }
 0x347   :  { %v592_v52 = vpop.xlane.xlu0 %591 }
 0x348   :  { %1259 = vrsqrt.f32 %v621_v22  ;;  %v620_v29 = vmax.f32 %v592_v52, 1e-24 }
 0x349   :  { %v589_v3 = vpop.xlane.xlu1 %588 }
 0x34a   :  { %1261 = vrsqrt.f32 %v620_v29 }
 0x34b   :  { %v1250_v1 = vpop.eup %1249  ;;  %v586_v59 = vpop.xlane.xlu0 %585 }
 0x34c   :  { %v1775_v44 = vmul.f32 %v1250_v1, %v1680_v0  ;;  %v619_v0 = vmax.f32 %v589_v3, 1e-24  ;;  %v618_v56 = vmax.f32 %v586_v59, 1e-24 }
 0x34d   :  { %v1252_v58 = vpop.eup %1251  ;;  %v583_v40 = vpop.xlane.xlu1 %582 }
 0x34e   :  { %1126 = vmatprep.subr.msk.mxu0 %vm562_vm0, %v1775_v44  ;;  %v1780_v60 = vmul.f32 %v1252_v58, %v1686_v54  ;;  %1263 = vrsqrt.f32 %v619_v0  ;;  %v617_v24 = vmax.f32 %v583_v40, 1e-24 }
 0x34f   :  { %v1254_v41 = vpop.eup %1253  ;;  %1127 = vmatpush3.xpose.msk.msra.mxu0 %vm562_vm0, %v1775_v44  ;;  %1265 = vrsqrt.f32 %v618_v56  ;;  %v580_v36 = vpop.xlane.xlu0 %579 }
 0x350   :  { %1128 = vmatprep.subr.msk.mxu0 %vm562_vm0, %v1780_v60  ;;  %v1787_v62 = vmul.f32 %v1254_v41, %v1677_v2 }
 0x351   :  { %v577_v55 = vpop.xlane.xlu1 %576  ;;  %v1256_v63 = vpop.eup %1255 }
 0x352   :  { %v1794_v17 = vmul.f32 %v1256_v63, %v1683_v23  ;;  %v616_v23 = vmax.f32 %v580_v36, 1e-24 }
 0x353   :  { %1129 = vmatpush3.xpose.msk.msra.mxu0 %vm562_vm0, %v1780_v60  ;;  %v1258_v26 = vpop.eup %1257  ;;  %v574_v32 = vpop.xlane.xlu0 %573 }
 0x354   :  { %1130 = vmatprep.subr.msk.mxu0 %vm562_vm0, %v1787_v62  ;;  %v1801_v31 = vmul.f32 %v1258_v26, %v1691_v20  ;;  %v615_v20 = vmax.f32 %v577_v55, 1e-24 }
 0x355   :  { %v571_v54 = vpop.xlane.xlu1 %570  ;;  %v1260_v37 = vpop.eup %1259 }
 0x356   :  { %v1808_v34 = vmul.f32 %v1260_v37, %v1699_v47  ;;  %v614_v47 = vmax.f32 %v574_v32, 1e-24  ;;  %v613_v43 = vmax.f32 %v571_v54, 1e-24 }
 0x357   :  { %1131 = vmatpush3.xpose.msk.msra.mxu0 %vm562_vm0, %v1787_v62  ;;  %v1262_v45 = vpop.eup %1261  ;;  %v568_v4 = vpop.xlane.xlu0 %567 }
 0x358   :  { %1132 = vmatprep.subr.msk.mxu0 %vm562_vm0, %v1794_v17  ;;  %v652_v33 = vmul.f32 %v1262_v45, %v1705_v53 }
 0x359   :  { %v565_v2 = vpop.xlane.xlu1 %564 }
 0x35a   :  { %v611_v25 = vmax.f32 %v565_v2, 1e-24 }
 0x35b   :  { %1133 = vmatpush3.xpose.msk.msra.mxu0 %vm562_vm0, %v1794_v17  ;;  %v1264_v49 = vpop.eup %1263 }
 0x35c   :  { %1267 = vrsqrt.f32 %v611_v25  ;;  %1134 = vmatprep.subr.msk.mxu0 %vm562_vm0, %v1801_v31  ;;  %v651_v57 = vmul.f32 %v1264_v49, %v1711_v16  ;;  %v1266_v48 = vpop.eup %1265  ;;  %v612_v16 = vmax.f32 %v568_v4, 1e-24 }
 0x35d   :  { %1269 = vrsqrt.f32 %v617_v24  ;;  %v650_v53 = vmul.f32 %v1266_v48, %v1717_v18 }
 0x35e   :  { %1271 = vrsqrt.f32 %v616_v23 }
 0x35f   :  { %1135 = vmatpush3.xpose.msk.msra.mxu0 %vm562_vm0, %v1801_v31  ;;  %1273 = vrsqrt.f32 %v615_v20 }
 0x360   :  { %1136 = vmatprep.subr.msk.mxu0 %vm562_vm0, %v1808_v34  ;;  %1275 = vrsqrt.f32 %v614_v47 }
 0x361   :  { %1277 = vrsqrt.f32 %v613_v43 }
 0x362   :  { %1279 = vrsqrt.f32 %v612_v16 }
 0x363   :  { %1137 = vmatpush3.xpose.msk.msra.mxu0 %vm562_vm0, %v1808_v34 }
 0x364   :  { %1138 = vmatprep.subr.msk.mxu0 %vm562_vm0, %v652_v33 }
 0x367   :  { %1139 = vmatpush3.xpose.msk.msra.mxu0 %vm562_vm0, %v652_v33 }
 0x368   :  { %1140 = vmatprep.subr.msk.mxu0 %vm562_vm0, %v651_v57 }
 0x369   :  { %v1268_v28 = vpop.eup %1267 }
 0x36a   :  { %v643_v50 = vmul.f32 %v1268_v28, %v1761_v61  ;;  %v1270_v21 = vpop.eup %1269 }
 0x36b   :  { %1141 = vmatpush3.xpose.msk.msra.mxu0 %vm562_vm0, %v651_v57  ;;  %v649_v30 = vmul.f32 %v1270_v21, %v1723_v19  ;;  %v1272_v27 = vpop.eup %1271 }
 0x36c   :  { %1142 = vmatprep.subr.msk.mxu0 %vm562_vm0, %v650_v53  ;;  %1158 = vmatprep.mubr.msk.f32.mxu0 %vm562_vm0, %v643_v50  ;;  %v648_v18 = vmul.f32 %v1272_v27, %v1729_v35  ;;  %v1274_v61 = vpop.eup %1273 }
 0x36d   :  { %v647_v51 = vmul.f32 %v1274_v61, %v1735_v38  ;;  %v1276_v11 = vpop.eup %1275 }
 0x36e   :  { %v646_v19 = vmul.f32 %v1276_v11, %v1741_v39  ;;  %v1278_v10 = vpop.eup %1277 }
 0x36f   :  { %1143 = vmatpush3.xpose.msk.msra.mxu0 %vm562_vm0, %v650_v53  ;;  %v645_v35 = vmul.f32 %v1278_v10, %v1747_v42  ;;  %v1280_v9 = vpop.eup %1279 }
 0x370   :  { %1144 = vmatprep.subr.msk.mxu0 %vm562_vm0, %v649_v30  ;;  %v644_v38 = vmul.f32 %v1280_v9, %v1754_v46 }
 0x373   :  { %1145 = vmatpush3.xpose.msk.msra.mxu0 %vm562_vm0, %v649_v30 }
 0x374   :  { %1146 = vmatprep.subr.msk.mxu0 %vm562_vm0, %v648_v18 }
 0x377   :  { %1147 = vmatpush3.xpose.msk.msra.mxu0 %vm562_vm0, %v648_v18 }
 0x378   :  { %1148 = vmatprep.subr.msk.mxu0 %vm562_vm0, %v647_v51 }
 0x37b   :  { %1149 = vmatpush3.xpose.msk.msra.mxu0 %vm562_vm0, %v647_v51 }
 0x37c   :  { %1150 = vmatprep.subr.msk.mxu0 %vm562_vm0, %v646_v19 }
 0x37f   :  { %1151 = vmatpush3.xpose.msk.msra.mxu0 %vm562_vm0, %v646_v19 }
 0x380   :  { %1152 = vmatprep.subr.msk.mxu0 %vm562_vm0, %v645_v35 }
 0x383   :  { %1153 = vmatpush3.xpose.msk.msra.mxu0 %vm562_vm0, %v645_v35 }
 0x384   :  { %1154 = vmatprep.subr.msk.mxu0 %vm562_vm0, %v644_v38 }
 0x387   :  { %1155 = vmatpush3.xpose.msk.msra.mxu0 %vm562_vm0, %v644_v38 }
 0x388   :  { %1156 = vmatprep.subr.msk.mxu0 %vm562_vm0, %v643_v50 }
 0x38b   :  { %1157 = vmatpush3.xpose.msk.msra.mxu0 %vm562_vm0, %v643_v50 }
 0x38e   :  { %1159 = vmatmul.mubr.msk.f32.vlgmr.msra.gmra.mxu0 %vm562_vm0, %v644_v38 }
 0x38f   :  { %1161 = vmatprep.mubr.msk.f32.mxu0 %vm562_vm0, %v645_v35 }
 0x392   :  { %1162 = vmatmul.mubr.msk.f32.gmra.mxu0 %vm562_vm0, %v646_v19 }
 0x393   :  { %1164 = vmatprep.mubr.msk.f32.mxu0 %vm562_vm0, %v647_v51 }
 0x396   :  { %1165 = vmatmul.mubr.msk.f32.gmra.mxu0 %vm562_vm0, %v648_v18 }
 0x397   :  { %1167 = vmatprep.mubr.msk.f32.mxu0 %vm562_vm0, %v649_v30 }
 0x39a   :  { %1168 = vmatmul.mubr.msk.f32.gmra.mxu0 %vm562_vm0, %v650_v53 }
 0x39b   :  { %1170 = vmatprep.mubr.msk.f32.mxu0 %vm562_vm0, %v651_v57 }
 0x39e   :  { %1171 = vmatmul.mubr.msk.f32.gmra.mxu0 %vm562_vm0, %v652_v33 }
 0x39f   :  { %1173 = vmatprep.mubr.msk.f32.mxu0 %vm562_vm0, %v1808_v34 }
 0x3a2   :  { %1174 = vmatmul.mubr.msk.f32.gmra.mxu0 %vm562_vm0, %v1801_v31 }
 0x3a3   :  { %1176 = vmatprep.mubr.msk.f32.mxu0 %vm562_vm0, %v1794_v17 }
 0x3a6   :  { %1177 = vmatmul.mubr.msk.f32.gmra.mxu0 %vm562_vm0, %v1787_v62 }
 0x3a7   :  { %1179 = vmatprep.mubr.msk.f32.mxu0 %vm562_vm0, %v1780_v60 }
 0x3aa   :  { %1180 = vmatmul.mubr.msk.f32.gmra.mxu0 %vm562_vm0, %v1775_v44 }
 0x44e   :  { %v1160_v39 = vpop.f32.mrf.mxu0 }
 0x44f   :  { %853 = vst [vmem:[#allocation2 + $0x8] sm:$0xff] %v1160_v39 }
 0x450   :  { %v773_v42 = vpop.f32.mrf.mxu0 }
 0x451   :  { %852 = vst [vmem:[#allocation2] sm:$0xff] %v773_v42 }
 0x452   :  { %v1163_v46 = vpop.f32.mrf.mxu0 }
 0x453   :  { %855 = vst [vmem:[#allocation2 + $0x18] sm:$0xff] %v1163_v46 }
 0x454   :  { %v783_v8 = vpop.f32.mrf.mxu0 }
 0x455   :  { %854 = vst [vmem:[#allocation2 + $0x10] sm:$0xff] %v783_v8 }
 0x456   :  { %v1166_v12 = vpop.f32.mrf.mxu0 }
 0x457   :  { %857 = vst [vmem:[#allocation2 + $0x28] sm:$0xff] %v1166_v12 }
 0x458   :  { %v793_v7 = vpop.f32.mrf.mxu0 }
 0x459   :  { %856 = vst [vmem:[#allocation2 + $0x20] sm:$0xff] %v793_v7 }
 0x45a   :  { %v1169_v13 = vpop.f32.mrf.mxu0 }
 0x45b   :  { %859 = vst [vmem:[#allocation2 + $0x38] sm:$0xff] %v1169_v13 }
 0x45c   :  { %v803_v6 = vpop.f32.mrf.mxu0 }
 0x45d   :  { %858 = vst [vmem:[#allocation2 + $0x30] sm:$0xff] %v803_v6 }
 0x45e   :  { %v1172_v14 = vpop.f32.mrf.mxu0 }
 0x45f   :  { %861 = vst [vmem:[#allocation2 + $0x48] sm:$0xff] %v1172_v14 }
 0x460   :  { %v813_v5 = vpop.f32.mrf.mxu0 }
 0x461   :  { %860 = vst [vmem:[#allocation2 + $0x40] sm:$0xff] %v813_v5 }
 0x462   :  { %v1175_v15 = vpop.f32.mrf.mxu0 }
 0x463   :  { %863 = vst [vmem:[#allocation2 + $0x58] sm:$0xff] %v1175_v15 }
 0x464   :  { %v823_v3 = vpop.f32.mrf.mxu0 }
 0x465   :  { %862 = vst [vmem:[#allocation2 + $0x50] sm:$0xff] %v823_v3 }
 0x466   :  { %v1178_v22 = vpop.f32.mrf.mxu0 }
 0x467   :  { %865 = vst [vmem:[#allocation2 + $0x68] sm:$0xff] %v1178_v22 }
 0x468   :  { %v833_v1 = vpop.f32.mrf.mxu0 }
 0x469   :  { %864 = vst [vmem:[#allocation2 + $0x60] sm:$0xff] %v833_v1 }
 0x46a   :  { %v1181_v52 = vpop.f32.mrf.mxu0 }
 0x46b   :  { %867 = vst [vmem:[#allocation2 + $0x78] sm:$0xff] %v1181_v52 }
 0x46c   :  { %v843_v44 = vpop.f32.mrf.mxu0 }
 0x46d   :  { %866 = vst [vmem:[#allocation2 + $0x70] sm:$0xff] %v843_v44 }
 0x46e   :  { %1292 = shalt.err (!%p1289_p4)
}
 0x46f   :  { %s1304_s28 = smov 128   ;;  %s1305_s29 = smov 8  }
 0x470   :  { %879 = dma.vmem_to_hbm [thread:$0]  %s874_s26, 2048, %s1875_s4, [#allocation3], %s1304_s28, %s1304_s28, %s1305_s29  }
 0x471   :  { %1301 = dma.done.wait [#allocation3], 2048  }
 0x472   :  { %1302 = vsyncadd [#allocation3], 4294965248 }
 0x473   :  { %883 = vsyncpa [#allocation3], 1 }

</bundles_post_ra>
